<compile_context>
chip_gen: v7x
topology: tpu7x:2x2x1
jax: 0.10.0
libtpu: 0.0.40
codegen_flags: <defaults>
</compile_context>

<pallas_src>
import functools

import numpy as np
import jax
import jax.numpy as jnp
from jax.experimental import pallas as pl
from jax.experimental.pallas import tpu as pltpu


# ---------------------------------------------------------------------------
# Small helpers
# ---------------------------------------------------------------------------

def _vmem_limit_bytes():
    """Scoped-VMEM budget: use headroom on v5e/v6e (128 MiB physical), stay
    conservative on v7x (64 MiB physical)."""
    try:
        cap = pltpu.get_tpu_info().vmem_capacity_bytes
        return int(min(96 * 1024 * 1024, (cap * 3) // 4))
    except Exception:
        return 48 * 1024 * 1024


def _pick_row_tile(H, target=32):
    """Largest multiple-of-8 divisor of H that is <= target; fallback to H."""
    target = min(target, max(8, H // 2))
    best = H
    t = 8
    while t <= min(H, target):
        if H % t == 0:
            best = t
        t += 8
    return best


# ---------------------------------------------------------------------------
# Kernel 1: fused cv1 + cv2 (two 1x1 convs on the same input), pixel-tiled
# ---------------------------------------------------------------------------

def _dual_pw_silu_kernel(x_ref, w_ref, b_ref, o1_ref, o2_ref, *, c_):
    """x:(TP,Cin)  w:(Cin,2c_)  b:(1,2c_)  ->  o1:(TP,c_)=cv1  o2:(TP,c_)=cv2."""
    y = jnp.dot(x_ref[...], w_ref[...], preferred_element_type=jnp.float32)
    y = y + b_ref[...]
    y = y * jax.nn.sigmoid(y)              # SiLU; sigmoid lowers to the EUP slot
    o1_ref[...] = y[:, :c_]
    o2_ref[...] = y[:, c_:]


def fused_cv1_cv2(x, w12, b12, c_, *, tile_px=512):
    """x:(N,H,W,Cin), w12:(Cin,2c_), b12:(2c_,) -> (y1, y2) each (N,H,W,c_)."""
    N, H, W, Cin = x.shape
    P = N * H * W
    tp = max(8, min(tile_px, (P + 1) // 2) // 8 * 8)   # >=2 tiles when possible
    xf = x.reshape(P, Cin)
    y1, y2 = pl.pallas_call(
        functools.partial(_dual_pw_silu_kernel, c_=c_),
        grid=(pl.cdiv(P, tp),),
        out_shape=(jax.ShapeDtypeStruct((P, c_), jnp.float32),
                   jax.ShapeDtypeStruct((P, c_), jnp.float32)),
        in_specs=[
            pl.BlockSpec((tp, Cin), lambda i: (i, 0)),
            pl.BlockSpec((Cin, 2 * c_), lambda i: (0, 0)),
            pl.BlockSpec((1, 2 * c_), lambda i: (0, 0)),
        ],
        out_specs=(pl.BlockSpec((tp, c_), lambda i: (i, 0)),
                   pl.BlockSpec((tp, c_), lambda i: (i, 0))),
        compiler_params=pltpu.CompilerParams(
            dimension_semantics=("parallel",),
            vmem_limit_bytes=_vmem_limit_bytes()),
    )(xf, w12, b12.reshape(1, 2 * c_))
    return y1.reshape(N, H, W, c_), y2.reshape(N, H, W, c_)


# ---------------------------------------------------------------------------
# Kernel 2: ParallelAtrousConv (3 dilated 3x3 convs + conv4) + cv3, all fused
# ---------------------------------------------------------------------------

def _pac_cv3_kernel(y1p_ref, y2_ref,
                    w1_ref, b1_ref, w2_ref, b2_ref, w3_ref, b3_ref,
                    w4a_ref, w4b_ref, w4c_ref, b4_ref,
                    wc3a_ref, wc3b_ref, bc3_ref,
                    o_ref, *, TH, W, c_, pad):
    """One (image, row-tile) step.

    y1p_ref: (Hp, Wp, c_)  zero-padded y1 for the whole image (fetched once per image)
    y2_ref : (TH, W, c_)   row tile of y2
    w{1,2,3}: (9, c_, cout) 3x3 tap weights (contiguous per tap), b*: (1, cout)
    w4{a,b,c}: row slices of the conv4 (2c_ -> c_) weight, wc3{a,b}: row slices of cv3
    o_ref  : (TH, W, c2)
    """
    r = pl.program_id(1)
    row0 = r * TH

    def dilated_branch(w_ref, b_ref, d):
        cout = w_ref.shape[-1]
        acc = jnp.zeros((TH * W, cout), jnp.float32)
        for ky in range(3):
            for kx in range(3):
                rs = row0 + pad + (ky - 1) * d
                cs = pad + (kx - 1) * d
                patch = y1p_ref[pl.ds(rs, TH), cs:cs + W, :]          # (TH, W, c_)
                acc = acc + jnp.dot(patch.reshape(TH * W, c_),
                                    w_ref[3 * ky + kx],
                                    preferred_element_type=jnp.float32)
        y = acc + b_ref[...]
        return y * jax.nn.sigmoid(y)                                  # SiLU

    a1 = dilated_branch(w1_ref, b1_ref, 1)                            # (TH*W, c_)
    a2 = dilated_branch(w2_ref, b2_ref, 2)                            # (TH*W, c_//2)
    a3 = dilated_branch(w3_ref, b3_ref, 3)                            # (TH*W, c_//2)

    # m.conv4 on concat([a1, a2, a3]) == sum of weight-slice partial matmuls
    # (the concatenated activation is never materialized).
    m = (jnp.dot(a1, w4a_ref[...], preferred_element_type=jnp.float32)
         + jnp.dot(a2, w4b_ref[...], preferred_element_type=jnp.float32)
         + jnp.dot(a3, w4c_ref[...], preferred_element_type=jnp.float32)
         + b4_ref[...])
    m = m * jax.nn.sigmoid(m)

    # cv3 on concat([m, y2]) == m @ wc3a + y2 @ wc3b
    y2 = y2_ref[...].reshape(TH * W, c_)
    z = (jnp.dot(m, wc3a_ref[...], preferred_element_type=jnp.float32)
         + jnp.dot(y2, wc3b_ref[...], preferred_element_type=jnp.float32)
         + bc3_ref[...])
    z = z * jax.nn.sigmoid(z)
    o_ref[...] = z.reshape(TH, W, o_ref.shape[-1])


def fused_pac_cv3(y1, y2, p):
    """y1,y2: (N,H,W,c_) -> (N,H,W,c2)."""
    N, H, W, c_ = y1.shape
    ch2 = c_ // 2
    c2 = p["wc3a"].shape[-1]
    pad = 3                                  # max dilation among (1, 2, 3)
    y1p = jnp.pad(y1, ((0, 0), (pad, pad), (pad, pad), (0, 0)))
    Hp, Wp = H + 2 * pad, W + 2 * pad

    th = _pick_row_tile(H)
    grid = (N, H // th)

    kern = functools.partial(_pac_cv3_kernel, TH=th, W=W, c_=c_, pad=pad)
    in_specs = [
        # padded y1: held resident per image (index map ignores the row axis)
        pl.BlockSpec((None, Hp, Wp, c_), lambda n, r: (n, 0, 0, 0)),
        # y2: row tile
        pl.BlockSpec((None, th, W, c_), lambda n, r: (n, r, 0, 0)),
        # grid-invariant weights / biases
        pl.BlockSpec((9, c_, c_),  lambda n, r: (0, 0, 0)),   # w1
        pl.BlockSpec((1, c_),      lambda n, r: (0, 0)),      # b1
        pl.BlockSpec((9, c_, ch2), lambda n, r: (0, 0, 0)),   # w2
        pl.BlockSpec((1, ch2),     lambda n, r: (0, 0)),      # b2
        pl.BlockSpec((9, c_, ch2), lambda n, r: (0, 0, 0)),   # w3
        pl.BlockSpec((1, ch2),     lambda n, r: (0, 0)),      # b3
        pl.BlockSpec((c_, c_),     lambda n, r: (0, 0)),      # w4a
        pl.BlockSpec((ch2, c_),    lambda n, r: (0, 0)),      # w4b
        pl.BlockSpec((ch2, c_),    lambda n, r: (0, 0)),      # w4c
        pl.BlockSpec((1, c_),      lambda n, r: (0, 0)),      # b4
        pl.BlockSpec((c_, c2),     lambda n, r: (0, 0)),      # wc3a
        pl.BlockSpec((c_, c2),     lambda n, r: (0, 0)),      # wc3b
        pl.BlockSpec((1, c2),      lambda n, r: (0, 0)),      # bc3
    ]
    out = pl.pallas_call(
        kern,
        grid=grid,
        out_shape=jax.ShapeDtypeStruct((N, H, W, c2), jnp.float32),
        in_specs=in_specs,
        out_specs=pl.BlockSpec((None, th, W, c2), lambda n, r: (n, r, 0, 0)),
        compiler_params=pltpu.CompilerParams(
            dimension_semantics=("parallel", "parallel"),
            vmem_limit_bytes=_vmem_limit_bytes()),
    )(y1p, y2,
      p["w1"], p["b1"], p["w2"], p["b2"], p["w3"], p["b3"],
      p["w4a"], p["w4b"], p["w4c"], p["b4"],
      p["wc3a"], p["wc3b"], p["bc3"])
    return out


# ---------------------------------------------------------------------------
# CSP_PAC forward (Pallas)
# ---------------------------------------------------------------------------

def csp_pac_forward(x_nchw, params):
    """Equivalent of CSP_PAC.forward.  Input/output are NCHW like PyTorch."""
    x = jnp.transpose(x_nchw, (0, 2, 3, 1)).astype(jnp.float32)   # NCHW -> NHWC

    c_ = params["cv1"][0].shape[-1]
    ch2 = c_ // 2

    # cv1 + cv2 fused into a single matmul with a concatenated (Cin, 2c_) weight.
    w12 = jnp.concatenate([params["cv1"][0][0, 0], params["cv2"][0][0, 0]], axis=-1)
    b12 = jnp.concatenate([params["cv1"][1], params["cv2"][1]], axis=-1)
    y1, y2 = fused_cv1_cv2(x, w12, b12, c_)

    # PAC + cv3 fused; concats become weight-slice partial matmuls in-kernel.
    w4 = params["m_conv4"][0][0, 0]          # (2c_, c_)
    wc3 = params["cv3"][0][0, 0]             # (2c_, c2)
    k2 = {
        "w1": params["m_conv1"][0].reshape(9, c_, c_),
        "b1": params["m_conv1"][1].reshape(1, c_),
        "w2": params["m_conv2"][0].reshape(9, c_, ch2),
        "b2": params["m_conv2"][1].reshape(1, ch2),
        "w3": params["m_conv3"][0].reshape(9, c_, ch2),
        "b3": params["m_conv3"][1].reshape(1, ch2),
        "w4a": w4[:c_], "w4b": w4[c_:c_ + ch2], "w4c": w4[c_ + ch2:],
        "b4": params["m_conv4"][1].reshape(1, c_),
        "wc3a": wc3[:c_], "wc3b": wc3[c_:],
        "bc3": params["cv3"][1].reshape(1, wc3.shape[-1]),
    }
    out = fused_pac_cv3(y1, y2, k2)
    return jnp.transpose(out, (0, 3, 1, 2))                       # NHWC -> NCHW


# ---------------------------------------------------------------------------
# Pure-JAX reference (correctness check)
# ---------------------------------------------------------------------------

def _ref_conv_silu(x, w, b, d=1):
    kh = w.shape[0]
    pad = d * (kh - 1) // 2
    y = jax.lax.conv_general_dilated(
        x, w, window_strides=(1, 1),
        padding=((pad, pad), (pad, pad)),
        rhs_dilation=(d, d),
        dimension_numbers=("NHWC", "HWIO", "NHWC"))
    y = y + b
    return y * jax.nn.sigmoid(y)


def csp_pac_reference(x_nchw, params):
    x = jnp.transpose(x_nchw, (0, 2, 3, 1)).astype(jnp.float32)
    y1 = _ref_conv_silu(x, *params["cv1"])
    y2 = _ref_conv_silu(x, *params["cv2"])
    a1 = _ref_conv_silu(y1, *params["m_conv1"], d=1)
    a2 = _ref_conv_silu(y1, *params["m_conv2"], d=2)
    a3 = _ref_conv_silu(y1, *params["m_conv3"], d=3)
    a = jnp.concatenate([a1, a2, a3], axis=-1)
    m_out = _ref_conv_silu(a, *params["m_conv4"])
    cat = jnp.concatenate([m_out, y2], axis=-1)
    out = _ref_conv_silu(cat, *params["cv3"])
    return jnp.transpose(out, (0, 3, 1, 2))


# ---------------------------------------------------------------------------
# Deterministic synthetic parameters (Conv weight + folded BatchNorm)
# ---------------------------------------------------------------------------

def init_conv_params(key, kh, kw, cin, cout):
    k1, k2, k3, k4, k5 = jax.random.split(key, 5)
    w = jax.random.normal(k1, (kh, kw, cin, cout), jnp.float32) / np.sqrt(kh * kw * cin)
    gamma = jax.random.uniform(k2, (cout,), jnp.float32, 0.5, 1.5)
    beta = jax.random.normal(k3, (cout,), jnp.float32) * 0.1
    mean = jax.random.normal(k4, (cout,), jnp.float32) * 0.1
    var = jax.random.uniform(k5, (cout,), jnp.float32, 0.5, 1.5)
    eps = 1e-3
    scale = gamma / jnp.sqrt(var + eps)
    return w * scale, beta - mean * scale


if __name__ == "__main__":
    key = jax.random.PRNGKey(0)
    keys = jax.random.split(key, 8)

    # CSP_PAC(c1=8, c2=8, e=0.5)  ->  c_ = 4
    c1, c2, e = 8, 8, 0.5
    c_ = int(c2 * e)
    N, H, W = 2, 16, 16

    x = jax.random.normal(keys[0], (N, c1, H, W), jnp.float32)   # NCHW, like PyTorch

    params = {
        "cv1":     init_conv_params(keys[1], 1, 1, c1, c_),
        "cv2":     init_conv_params(keys[2], 1, 1, c1, c_),
        "cv3":     init_conv_params(keys[3], 1, 1, 2 * c_, c2),
        "m_conv1": init_conv_params(keys[4], 3, 3, c_, c_),
        "m_conv2": init_conv_params(keys[5], 3, 3, c_, c_ // 2),
        "m_conv3": init_conv_params(keys[6], 3, 3, c_, c_ // 2),
        "m_conv4": init_conv_params(keys[7], 1, 1, 2 * c_, c_),
    }

    out = jax.block_until_ready(csp_pac_forward(x, params))
    assert out.shape == (N, c2, H, W), out.shape

    ref = jax.block_until_ready(csp_pac_reference(x, params))
    np.testing.assert_allclose(np.asarray(out), np.asarray(ref), rtol=1e-2, atol=1e-2)

    print("KERNEL_OK")
</pallas_src>

<mosaic_0001>
module attributes {stable_mosaic.version = 11 : i64} {
  func.func @_dual_pw_silu_kernel(%arg0: i32, %arg1: memref<256x8xf32, #tpu.memory_space<vmem>>, %arg2: memref<8x8xf32, #tpu.memory_space<vmem>>, %arg3: memref<1x8xf32, #tpu.memory_space<vmem>>, %arg4: memref<256x4xf32, #tpu.memory_space<vmem>>, %arg5: memref<256x4xf32, #tpu.memory_space<vmem>>) attributes {dimension_semantics = [#tpu.dimension_semantics<parallel>], iteration_bounds = array<i64: 2>, scalar_prefetch = 0 : i64, scratch_operands = 0 : i64, tpu.core_type = #tpu.core_type<tc>, window_params = [{transform_indices = @transform_0, window_bounds = array<i64: 256, 8>}, {pipeline_mode = #tpu.pipeline_mode<synchronous>, transform_indices = @transform_1, window_bounds = array<i64: 8, 8>}, {pipeline_mode = #tpu.pipeline_mode<synchronous>, transform_indices = @transform_2, window_bounds = array<i64: 1, 8>}, {transform_indices = @transform_3, window_bounds = array<i64: 256, 4>}, {transform_indices = @transform_4, window_bounds = array<i64: 256, 4>}]} {
    %c0 = arith.constant 0 : index
    %c0_0 = arith.constant 0 : index
    %0 = vector.load %arg1[%c0, %c0_0] : memref<256x8xf32, #tpu.memory_space<vmem>>, vector<256x8xf32>
    %c0_1 = arith.constant 0 : index
    %c0_2 = arith.constant 0 : index
    %1 = vector.load %arg2[%c0_1, %c0_2] : memref<8x8xf32, #tpu.memory_space<vmem>>, vector<8x8xf32>
    %cst = arith.constant dense<0.000000e+00> : vector<256x8xf32>
    %2 = tpu.matmul %0, %1, %cst {dimension_numbers = #tpu.dot_dimension_numbers<[1], [0], [0], [1], [0, 0, 1, 1], [], []>} : vector<256x8xf32>, vector<8x8xf32>, vector<256x8xf32> -> vector<256x8xf32>
    %c0_3 = arith.constant 0 : index
    %c0_4 = arith.constant 0 : index
    %3 = vector.load %arg3[%c0_3, %c0_4] : memref<1x8xf32, #tpu.memory_space<vmem>>, vector<1x8xf32>
    %4 = vector.broadcast %3 : vector<1x8xf32> to vector<256x8xf32>
    %5 = arith.addf %2, %4 : vector<256x8xf32>
    %6 = arith.negf %5 : vector<256x8xf32>
    %7 = math.exp %6 : vector<256x8xf32>
    %cst_5 = arith.constant 1.000000e+00 : f32
    %8 = vector.broadcast %cst_5 : f32 to vector<256x8xf32>
    %9 = arith.addf %8, %7 : vector<256x8xf32>
    %10 = arith.divf %8, %9 : vector<256x8xf32>
    %11 = arith.mulf %5, %10 : vector<256x8xf32>
    %12 = vector.extract_strided_slice %11 {offsets = [0, 0], sizes = [256, 4], strides = [1, 1]} : vector<256x8xf32> to vector<256x4xf32>
    %c0_6 = arith.constant 0 : index
    %c0_7 = arith.constant 0 : index
    %13 = vector.load %arg4[%c0_6, %c0_7] : memref<256x4xf32, #tpu.memory_space<vmem>>, vector<256x4xf32>
    tpu.vector_store %arg4[%c0_6, %c0_7], %12 {strides = array<i32>} : memref<256x4xf32, #tpu.memory_space<vmem>>, vector<256x4xf32>,
    %14 = vector.extract_strided_slice %11 {offsets = [0, 4], sizes = [256, 4], strides = [1, 1]} : vector<256x8xf32> to vector<256x4xf32>
    %c0_8 = arith.constant 0 : index
    %c0_9 = arith.constant 0 : index
    %15 = vector.load %arg5[%c0_8, %c0_9] : memref<256x4xf32, #tpu.memory_space<vmem>>, vector<256x4xf32>
    tpu.vector_store %arg5[%c0_8, %c0_9], %14 {strides = array<i32>} : memref<256x4xf32, #tpu.memory_space<vmem>>, vector<256x4xf32>,
    return
  }
  func.func @transform_0(%arg0: i32) -> (i32, i32) {
    %c0_i32 = arith.constant 0 : i32
    %c0_i32_0 = arith.constant 0 : i32
    return %arg0, %c0_i32 : i32, i32
  }
  func.func @transform_1(%arg0: i32) -> (i32, i32) {
    %c0_i32 = arith.constant 0 : i32
    %c0_i32_0 = arith.constant 0 : i32
    %c0_i32_1 = arith.constant 0 : i32
    return %c0_i32, %c0_i32_0 : i32, i32
  }
  func.func @transform_2(%arg0: i32) -> (i32, i32) {
    %c0_i32 = arith.constant 0 : i32
    %c0_i32_0 = arith.constant 0 : i32
    %c0_i32_1 = arith.constant 0 : i32
    return %c0_i32, %c0_i32_0 : i32, i32
  }
  func.func @transform_3(%arg0: i32) -> (i32, i32) {
    %c0_i32 = arith.constant 0 : i32
    %c0_i32_0 = arith.constant 0 : i32
    return %arg0, %c0_i32 : i32, i32
  }
  func.func @transform_4(%arg0: i32) -> (i32, i32) {
    %c0_i32 = arith.constant 0 : i32
    %c0_i32_0 = arith.constant 0 : i32
    return %arg0, %c0_i32 : i32, i32
  }
}

</mosaic_0001>

<bundles_post_ra>
// kernel: tpu_custom_call.1
= control target key start
LH: loop header
LB: loop body
LE: loop exit
PB: predicated region body
PF: predicated region fallthrough
CT: control target
= control target key end

     0   :  { %s1418_s15 = smov 0   ;;  %s1875_s0 = inlined_call_operand.vmem [shape: f32[512,8], index: 0, kind: input, shape index: {}]   ;;  %s1876_s1 = inlined_call_operand.vmem [shape: f32[8,8], index: 1, kind: input, shape index: {}]   ;;  %s1877_s2 = inlined_call_operand.vmem [shape: f32[1,8], index: 2, kind: input, shape index: {}]   ;;  %s1878_s3 = inlined_call_operand.vmem [shape: f32[512,4], index: 3, kind: output, shape index: {0}]   ;;  %s1879_s4 = inlined_call_operand.vmem [shape: f32[512,4], index: 4, kind: output, shape index: {1}]  }
   0x1 LB: > { %s1084_s16 = sadd.s32 4294967295, %s1390_s15   ;;  %p1088_p0 = scmp.ge.s32.totalorder %s1390_s15, 1  ;;  %s1390_s15 = sphi %s1418_s15, %s15_s15  }
   0x2   : > { %p166_p1 = scmp.lt.s32.totalorder %s1390_s15, 3 }
   0x4   : > { %p167_p2 = pnand %p1088_p0, %p166_p1 }
   0x5   : > { %v247_v0 = vld [vmem:[%s1876_s1] sm:$0xff] (!%p167_p2)  ;;  %s1089_s19 = sshll.u32 (!%p167_p2), %s1084_s16, 5  ;;  %vm255_vm0 = vcmask (!%p167_p2), 64512   ;;  %vm801_vm1 = vcmask (!%p167_p2), 31744   ;;  %s1392_s29 = smov (!%p167_p2), 124  }
   0x6   : > { %170 = sbr.rel (%p167_p2) target bundleno = 440 (0x1b8), region = 32  ;;  %1195 = vmatprep.subr.mxu0 (!%p167_p2), %v247_v0  ;;  %1245 = vmatprep.subr.mxu1 (!%p167_p2), %v247_v0  ;;  %p198_p3 = scmp.lt.s32.totalorder (!%p167_p2), %s1089_s19, 63  ;;  %v1504_v33 = vld [vmem:[%s1877_s2] ss:$0 sm:$0xff] (!%p167_p2) }
   0x7   : > { %1196 = vmatpush3.msra.mxu0 (!%p167_p2), %v247_v0  ;;  %1246 = vmatpush3.msra.mxu1 (!%p167_p2), %v247_v0 }
   0xd   : > { %s1881_s19 = smov (!%p198_p3, %s1089_s19), 63 }
   0xe   : > { %s1429_s20 = sshll.u32 %s1881_s19, 3 }
   0xf   : > { %s1435_s23 = scalar_lea.vmem %s1875_s0, %s1429_s20  ;;  %s1590_s28 = scalar_lea.vmem %s1878_s3, %s1429_s20 }
  0x10   : > { %v215_v1 = vld [vmem:[%s1435_s23] sm:$0xff]  ;;  %v216_v3 = vld [vmem:[%s1435_s23 + $0x8] sm:$0xff]  ;;  %v217_v5 = vld [vmem:[%s1435_s23 + $0x10] sm:$0xff]  ;;  %s1806_s6 = scalar_lea.vmem %s1879_s4, %s1429_s20 }
  0x11   : > { %v231_v2 = vld [vmem:[%s1435_s23 + $0x80] sm:$0xff]  ;;  %1197 = vmatprep.mubr.msk.f32.mxu0 %vm255_vm0, %v215_v1  ;;  %v232_v4 = vld [vmem:[%s1435_s23 + $0x88] sm:$0xff]  ;;  %v233_v6 = vld [vmem:[%s1435_s23 + $0x90] sm:$0xff] }
  0x12   : > { %1221 = vmatprep.mubr.msk.f32.mxu1 %vm255_vm0, %v231_v2  ;;  %1198 = vmatmul.mubr.msk.f32.vlgmr.msra.gmra.mrb[0].mxu0 %vm255_vm0, %v216_v3  ;;  %v218_v7 = vld [vmem:[%s1435_s23 + $0x18] sm:$0xff]  ;;  %v219_v9 = vld [vmem:[%s1435_s23 + $0x20] sm:$0xff]  ;;  %v220_v11 = vld [vmem:[%s1435_s23 + $0x28] sm:$0xff] }
  0x13   : > { %1222 = vmatmul.mubr.msk.f32.vlgmr.msra.gmra.mrb[0].mxu1 %vm255_vm0, %v232_v4  ;;  %1200 = vmatprep.mubr.msk.f32.mxu0 %vm255_vm0, %v217_v5  ;;  %v234_v8 = vld [vmem:[%s1435_s23 + $0x98] sm:$0xff]  ;;  %v235_v10 = vld [vmem:[%s1435_s23 + $0xa0] sm:$0xff]  ;;  %v236_v12 = vld [vmem:[%s1435_s23 + $0xa8] sm:$0xff] }
  0x14   : > { %1224 = vmatprep.mubr.msk.f32.mxu1 %vm255_vm0, %v233_v6  ;;  %v221_v13 = vld [vmem:[%s1435_s23 + $0x30] sm:$0xff]  ;;  %v222_v15 = vld [vmem:[%s1435_s23 + $0x38] sm:$0xff]  ;;  %v223_v17 = vld [vmem:[%s1435_s23 + $0x40] sm:$0xff] }
  0x15   : > { %v237_v14 = vld [vmem:[%s1435_s23 + $0xb0] sm:$0xff]  ;;  %v238_v16 = vld [vmem:[%s1435_s23 + $0xb8] sm:$0xff]  ;;  %v239_v18 = vld [vmem:[%s1435_s23 + $0xc0] sm:$0xff] }
  0x16   : > { %1201 = vmatmul.mubr.msk.f32.gmra.mrb[2].mxu0 %vm255_vm0, %v218_v7  ;;  %v224_v19 = vld [vmem:[%s1435_s23 + $0x48] sm:$0xff]  ;;  %v225_v21 = vld [vmem:[%s1435_s23 + $0x50] sm:$0xff]  ;;  %v226_v23 = vld [vmem:[%s1435_s23 + $0x58] sm:$0xff] }
  0x17   : > { %1225 = vmatmul.mubr.msk.f32.gmra.mrb[2].mxu1 %vm255_vm0, %v234_v8  ;;  %1203 = vmatprep.mubr.msk.f32.mxu0 %vm255_vm0, %v219_v9  ;;  %v240_v20 = vld [vmem:[%s1435_s23 + $0xc8] sm:$0xff]  ;;  %v241_v22 = vld [vmem:[%s1435_s23 + $0xd0] sm:$0xff]  ;;  %v242_v24 = vld [vmem:[%s1435_s23 + $0xd8] sm:$0xff] }
  0x18   : > { %1227 = vmatprep.mubr.msk.f32.mxu1 %vm255_vm0, %v235_v10  ;;  %v227_v25 = vld [vmem:[%s1435_s23 + $0x60] sm:$0xff]  ;;  %v228_v27 = vld [vmem:[%s1435_s23 + $0x68] sm:$0xff]  ;;  %v229_v29 = vld [vmem:[%s1435_s23 + $0x70] sm:$0xff] }
  0x19   : > { %v243_v26 = vld [vmem:[%s1435_s23 + $0xe0] sm:$0xff]  ;;  %v244_v28 = vld [vmem:[%s1435_s23 + $0xe8] sm:$0xff]  ;;  %v245_v30 = vld [vmem:[%s1435_s23 + $0xf0] sm:$0xff] }
  0x1a   : > { %1204 = vmatmul.mubr.msk.f32.gmra.mrb[4].mxu0 %vm255_vm0, %v220_v11  ;;  %v230_v31 = vld [vmem:[%s1435_s23 + $0x78] sm:$0xff] }
  0x1b   : > { %1228 = vmatmul.mubr.msk.f32.gmra.mrb[4].mxu1 %vm255_vm0, %v236_v12  ;;  %1206 = vmatprep.mubr.msk.f32.mxu0 %vm255_vm0, %v221_v13  ;;  %v246_v32 = vld [vmem:[%s1435_s23 + $0xf8] sm:$0xff] }
  0x1c   : > { %1230 = vmatprep.mubr.msk.f32.mxu1 %vm255_vm0, %v237_v14 }
  0x1e   : > { %1207 = vmatmul.mubr.msk.f32.gmra.mrb[6].mxu0 %vm255_vm0, %v222_v15 }
  0x1f   : > { %1231 = vmatmul.mubr.msk.f32.gmra.mrb[6].mxu1 %vm255_vm0, %v238_v16  ;;  %1209 = vmatprep.mubr.msk.f32.mxu0 %vm255_vm0, %v223_v17 }
  0x20   : > { %1233 = vmatprep.mubr.msk.f32.mxu1 %vm255_vm0, %v239_v18 }
  0x22   : > { %1210 = vmatmul.mubr.msk.f32.gmra.mrb[8].mxu0 %vm255_vm0, %v224_v19 }
  0x23   : > { %1234 = vmatmul.mubr.msk.f32.gmra.mrb[8].mxu1 %vm255_vm0, %v240_v20  ;;  %1212 = vmatprep.mubr.msk.f32.mxu0 %vm255_vm0, %v225_v21 }
  0x24   : > { %1236 = vmatprep.mubr.msk.f32.mxu1 %vm255_vm0, %v241_v22 }
  0x26   : > { %1213 = vmatmul.mubr.msk.f32.gmra.mrb[10].mxu0 %vm255_vm0, %v226_v23 }
  0x27   : > { %1237 = vmatmul.mubr.msk.f32.gmra.mrb[10].mxu1 %vm255_vm0, %v242_v24  ;;  %1215 = vmatprep.mubr.msk.f32.mxu0 %vm255_vm0, %v227_v25 }
  0x28   : > { %1239 = vmatprep.mubr.msk.f32.mxu1 %vm255_vm0, %v243_v26 }
  0x2a   : > { %1216 = vmatmul.mubr.msk.f32.gmra.mrb[12].mxu0 %vm255_vm0, %v228_v27 }
  0x2b   : > { %1240 = vmatmul.mubr.msk.f32.gmra.mrb[12].mxu1 %vm255_vm0, %v244_v28  ;;  %1218 = vmatprep.mubr.msk.f32.mxu0 %vm255_vm0, %v229_v29 }
  0x2c   : > { %1242 = vmatprep.mubr.msk.f32.mxu1 %vm255_vm0, %v245_v30 }
  0x2e   : > { %1219 = vmatmul.mubr.msk.f32.gmra.mrb[14].mxu0 %vm255_vm0, %v230_v31 }
  0x2f   : > { %1243 = vmatmul.mubr.msk.f32.gmra.mrb[14].mxu1 %vm255_vm0, %v246_v32 }
  0xe5   : > { %v1199_v34 = vpop.f32.mrb[0].mxu0 }
  0xe6   : > { %v1223_v35 = vpop.f32.mrb[0].mxu1  ;;  %v1507_v36 = vadd.f32 %v1199_v34, %v1504_v33  ;;  %v418_v38 = vpop.f32.mrb[1].mxu0 }
  0xe7   : > { %v1510_v37 = vadd.f32 %v1223_v35, %v1504_v33  ;;  %v498_v39 = vpop.f32.mrb[1].mxu1  ;;  %v1513_v40 = vadd.f32 %v1504_v33, %v418_v38 }
  0xe8   : > { %v1516_v41 = vadd.f32 %v1504_v33, %v498_v39  ;;  %v1129_v42 = vmul.f32 -1.442695, %v1507_v36 }
  0xe9   : > { %v1145_v43 = vmul.f32 -1.442695, %v1510_v37  ;;  %v1128_v44 = vmul.f32 -1.442695, %v1513_v40  ;;  %v1202_v46 = vpop.f32.mrb[2].mxu0 }
  0xea   : > { %v1144_v45 = vmul.f32 -1.442695, %v1516_v41  ;;  %v1226_v47 = vpop.f32.mrb[2].mxu1  ;;  %1256 = vpow2.f32 %v1129_v42  ;;  %v1523_v48 = vadd.f32 %v1202_v46, %v1504_v33  ;;  %v428_v50 = vpop.f32.mrb[3].mxu0 }
  0xeb   : > { %v1526_v49 = vadd.f32 %v1226_v47, %v1504_v33  ;;  %v508_v51 = vpop.f32.mrb[3].mxu1  ;;  %1258 = vpow2.f32 %v1145_v43  ;;  %v1529_v52 = vadd.f32 %v1504_v33, %v428_v50 }
  0xec   : > { %v1532_v53 = vadd.f32 %v1504_v33, %v508_v51  ;;  %1260 = vpow2.f32 %v1128_v44  ;;  %v1131_v54 = vmul.f32 -1.442695, %v1523_v48 }
  0xed   : > { %v1147_v55 = vmul.f32 -1.442695, %v1526_v49  ;;  %1262 = vpow2.f32 %v1144_v45  ;;  %v1130_v56 = vmul.f32 -1.442695, %v1529_v52  ;;  %v1205_v58 = vpop.f32.mrb[4].mxu0 }
  0xee   : > { %v1146_v57 = vmul.f32 -1.442695, %v1532_v53  ;;  %v1229_v59 = vpop.f32.mrb[4].mxu1  ;;  %1264 = vpow2.f32 %v1131_v54  ;;  %v1539_v60 = vadd.f32 %v1205_v58, %v1504_v33  ;;  %v438_v62 = vpop.f32.mrb[5].mxu0 }
  0xef   : > { %v1542_v61 = vadd.f32 %v1229_v59, %v1504_v33  ;;  %v518_v63 = vpop.f32.mrb[5].mxu1  ;;  %1266 = vpow2.f32 %v1147_v55  ;;  %v1545_v0 = vadd.f32 %v1504_v33, %v438_v62 }
  0xf0   : > { %v1548_v1 = vadd.f32 %v1504_v33, %v518_v63  ;;  %1268 = vpow2.f32 %v1130_v56  ;;  %v1133_v2 = vmul.f32 -1.442695, %v1539_v60 }
  0xf1   : > { %v1149_v3 = vmul.f32 -1.442695, %v1542_v61  ;;  %1270 = vpow2.f32 %v1146_v57  ;;  %v1132_v4 = vmul.f32 -1.442695, %v1545_v0  ;;  %v1208_v6 = vpop.f32.mrb[6].mxu0 }
  0xf2   : > { %v1148_v5 = vmul.f32 -1.442695, %v1548_v1  ;;  %v1232_v7 = vpop.f32.mrb[6].mxu1  ;;  %1272 = vpow2.f32 %v1133_v2  ;;  %v1555_v8 = vadd.f32 %v1208_v6, %v1504_v33  ;;  %v448_v9 = vpop.f32.mrb[7].mxu0 }
  0xf3   : > { %v528_v10 = vpop.f32.mrb[7].mxu1  ;;  %1274 = vpow2.f32 %v1149_v3  ;;  %v1563_v42 = vadd.f32 %v1232_v7, %v1504_v33  ;;  %v1566_v45 = vadd.f32 %v1504_v33, %v448_v9 }
  0xf4   : > { %v1257_v11 = vpop.eup %1256  ;;  %1276 = vpow2.f32 %v1132_v4  ;;  %v1135_v12 = vmul.f32 -1.442695, %v1555_v8  ;;  %v1571_v51 = vadd.f32 %v1504_v33, %v528_v10 }
  0xf5   : > { %v1259_v13 = vpop.eup %1258  ;;  %v674_v14 = vadd.f32 1.0, %v1257_v11  ;;  %1278 = vpow2.f32 %v1148_v5  ;;  %v1211_v15 = vpop.f32.mrb[8].mxu0  ;;  %v1151_v2 = vmul.f32 -1.442695, %v1563_v42  ;;  %v1134_v6 = vmul.f32 -1.442695, %v1566_v45 }
  0xf6   : > { %v1261_v16 = vpop.eup %1260  ;;  %v690_v17 = vadd.f32 1.0, %v1259_v13  ;;  %1280 = vpow2.f32 %v1135_v12  ;;  %v1235_v18 = vpop.f32.mrb[8].mxu1  ;;  %v1578_v58 = vadd.f32 %v1211_v15, %v1504_v33  ;;  %v1150_v11 = vmul.f32 -1.442695, %v1571_v51 }
  0xf7   : > { %v458_v19 = vpop.f32.mrb[9].mxu0  ;;  %v1263_v20 = vpop.eup %1262  ;;  %1282 = vrcp.f32 %v674_v14  ;;  %v673_v21 = vadd.f32 1.0, %v1261_v16  ;;  %v1584_v3 = vadd.f32 %v1235_v18, %v1504_v33 }
  0xf8   : > { %v538_v22 = vpop.f32.mrb[9].mxu1  ;;  %v1265_v23 = vpop.eup %1264  ;;  %1284 = vrcp.f32 %v690_v17  ;;  %v689_v24 = vadd.f32 1.0, %v1263_v20  ;;  %v1594_v7 = vadd.f32 %v1504_v33, %v458_v19  ;;  %v1137_v17 = vmul.f32 -1.442695, %v1578_v58 }
  0xf9   : > { %v1267_v25 = vpop.eup %1266  ;;  %1286 = vrcp.f32 %v673_v21  ;;  %v676_v26 = vadd.f32 1.0, %v1265_v23  ;;  %v1214_v27 = vpop.f32.mrb[10].mxu0  ;;  %v1600_v12 = vadd.f32 %v1504_v33, %v538_v22 }
  0xfa   : > { %v1269_v28 = vpop.eup %1268  ;;  %1288 = vrcp.f32 %v689_v24  ;;  %v692_v29 = vadd.f32 1.0, %v1267_v25  ;;  %v1238_v30 = vpop.f32.mrb[10].mxu1  ;;  %v1609_v18 = vadd.f32 %v1214_v27, %v1504_v33  ;;  %v1136_v25 = vmul.f32 -1.442695, %v1594_v7 }
  0xfb   : > { %v1558_v31 = vpop.f32.mrb[11].mxu0  ;;  %v1271_v32 = vpop.eup %1270  ;;  %1290 = vrcp.f32 %v676_v26  ;;  %v675_v34 = vadd.f32 1.0, %v1269_v28  ;;  %v1617_v23 = vadd.f32 %v1238_v30, %v1504_v33 }
  0xfc   : > { %v1560_v35 = vpop.f32.mrb[11].mxu1  ;;  %v1273_v38 = vpop.eup %1272  ;;  %1292 = vrcp.f32 %v692_v29  ;;  %v691_v39 = vadd.f32 1.0, %v1271_v32 }
  0xfd   : > { %v1275_v43 = vpop.eup %1274  ;;  %1294 = vrcp.f32 %v675_v34  ;;  %v678_v44 = vadd.f32 1.0, %v1273_v38  ;;  %v1568_v46 = vpop.f32.mrb[12].mxu0  ;;  %v1637_v28 = vadd.f32 %v1504_v33, %v1560_v35  ;;  %v1155_v35 = vmul.f32 -1.442695, %v1617_v23 }
  0xfe   : > { %v1277_v47 = vpop.eup %1276  ;;  %1296 = vrcp.f32 %v691_v39  ;;  %v694_v50 = vadd.f32 1.0, %v1275_v43  ;;  %v1573_v54 = vpop.f32.mrb[12].mxu1 }
  0xff   : > { %v1575_v55 = vpop.f32.mrb[13].mxu0  ;;  %v1279_v56 = vpop.eup %1278  ;;  %1298 = vrcp.f32 %v678_v44  ;;  %v677_v57 = vadd.f32 1.0, %v1277_v47 }
 0x100   : > { %v1580_v59 = vpop.f32.mrb[13].mxu1  ;;  %v1281_v62 = vpop.eup %1280  ;;  %1300 = vrcp.f32 %v694_v50  ;;  %v693_v63 = vadd.f32 1.0, %v1279_v56 }
 0x101   : > { %v1283_v4 = vpop.eup %1282  ;;  %1302 = vrcp.f32 %v677_v57  ;;  %v680_v5 = vadd.f32 1.0, %v1281_v62  ;;  %v1596_v9 = vpop.f32.mrb[14].mxu0 }
 0x102   : > { %v1285_v10 = vpop.eup %1284  ;;  %1304 = vrcp.f32 %v693_v63  ;;  %v1602_v13 = vpop.f32.mrb[15].mxu0  ;;  %v770_v14 = vmul.f32 %v1283_v4, %v1507_v36  ;;  %v1153_v36 = vmul.f32 -1.442695, %v1584_v3 }
 0x103   : > { %v1605_v15 = vpop.f32.mrb[14].mxu1  ;;  %v1287_v16 = vpop.eup %1286  ;;  %1306 = vrcp.f32 %v680_v5  ;;  %v786_v19 = vmul.f32 %v1285_v10, %v1510_v37 }
 0x104   : > { %v1612_v20 = vpop.f32.mrb[15].mxu1  ;;  %v1289_v21 = vpop.eup %1288  ;;  %v769_v22 = vmul.f32 %v1287_v16, %v1513_v40  ;;  %1308 = vpow2.f32 %v1151_v2  ;;  %868 = vrot.lane.b32.xlu0 %v770_v14, %s1392_s29  ;;  %803 = vst.msk [vmem:[%s1590_s28 + $0x8] sm:$0xff] %vm801_vm1, %v770_v14  ;;  %v1626_v40 = vadd.f32 %v1504_v33, %v1558_v31  ;;  %v1139_v31 = vmul.f32 -1.442695, %v1609_v18 }
 0x105   : > { %v1291_v37 = vpop.eup %1290  ;;  %v785_v24 = vmul.f32 %v1289_v21, %v1516_v41  ;;  %1310 = vpow2.f32 %v1134_v6  ;;  %900 = vrot.lane.b32.xlu1 %v786_v19, %s1392_s29  ;;  %819 = vst.msk [vmem:[%s1590_s28 + $0x88] sm:$0xff] %vm801_vm1, %v786_v19  ;;  %v1152_v41 = vmul.f32 -1.442695, %v1600_v12 }
 0x106   : > { %v1293_v26 = vpop.eup %1292  ;;  %802 = vst.msk [vmem:[%s1590_s28] sm:$0xff] %vm801_vm1, %v769_v22  ;;  %v772_v27 = vmul.f32 %v1291_v37, %v1523_v48  ;;  %1312 = vpow2.f32 %v1150_v11  ;;  %v1645_v48 = vadd.f32 %v1568_v46, %v1504_v33  ;;  %v1138_v43 = vmul.f32 -1.442695, %v1626_v40 }
 0x107   : > { %v1295_v29 = vpop.eup %1294  ;;  %818 = vst.msk [vmem:[%s1590_s28 + $0x80] sm:$0xff] %vm801_vm1, %v785_v24  ;;  %v788_v30 = vmul.f32 %v1293_v26, %v1526_v49  ;;  %1314 = vpow2.f32 %v1137_v17  ;;  %v1653_v49 = vadd.f32 %v1573_v54, %v1504_v33  ;;  %v1154_v46 = vmul.f32 -1.442695, %v1637_v28 }
 0x108   : > { %v1297_v32 = vpop.eup %1296  ;;  %805 = vst.msk [vmem:[%s1590_s28 + $0x18] sm:$0xff] %vm801_vm1, %v772_v27  ;;  %v771_v34 = vmul.f32 %v1295_v29, %v1529_v52  ;;  %1316 = vpow2.f32 %v1153_v36  ;;  %866 = vrot.lane.b32.xlu0 %v769_v22, %s1392_s29  ;;  %v1141_v50 = vmul.f32 -1.442695, %v1645_v48  ;;  %v1694_v37 = vadd.f32 %v1504_v33, %v1575_v55 }
 0x109   : > { %v1299_v38 = vpop.eup %1298  ;;  %821 = vst.msk [vmem:[%s1590_s28 + $0x98] sm:$0xff] %vm801_vm1, %v788_v30  ;;  %v787_v39 = vmul.f32 %v1297_v32, %v1532_v53  ;;  %1318 = vpow2.f32 %v1136_v25  ;;  %872 = vrot.lane.b32.xlu1 %v772_v27, %s1392_s29  ;;  %v1698_v26 = vadd.f32 %v1504_v33, %v1580_v59  ;;  %v1702_v29 = vadd.f32 %v1596_v9, %v1504_v33 }
 0x10a   : > { %v1301_v52 = vpop.eup %1300  ;;  %804 = vst.msk [vmem:[%s1590_s28 + $0x10] sm:$0xff] %vm801_vm1, %v771_v34  ;;  %v774_v44 = vmul.f32 %v1299_v38, %v1539_v60  ;;  %1320 = vpow2.f32 %v1152_v41  ;;  %v1157_v60 = vmul.f32 -1.442695, %v1653_v49  ;;  %v1713_v9 = vadd.f32 %v1605_v15, %v1504_v33 }
 0x10b   : > { %v1303_v47 = vpop.eup %1302  ;;  %820 = vst.msk [vmem:[%s1590_s28 + $0x90] sm:$0xff] %vm801_vm1, %v787_v39  ;;  %v790_v53 = vmul.f32 %v1301_v52, %v1542_v61  ;;  %1322 = vpow2.f32 %v1139_v31  ;;  %v1707_v31 = vadd.f32 %v1504_v33, %v1602_v13  ;;  %v1718_v13 = vadd.f32 %v1504_v33, %v1612_v20 }
 0x10c   : > { %v1305_v54 = vpop.eup %1304  ;;  %807 = vst.msk [vmem:[%s1590_s28 + $0x28] sm:$0xff] %vm801_vm1, %v774_v44  ;;  %v773_v56 = vmul.f32 %v1303_v47, %v1545_v0  ;;  %1324 = vpow2.f32 %v1155_v35  ;;  %898 = vrot.lane.b32.xlu0 %v785_v24, %s1392_s29 }
 0x10d   : > { %v1307_v57 = vpop.eup %1306  ;;  %823 = vst.msk [vmem:[%s1590_s28 + $0xa8] sm:$0xff] %vm801_vm1, %v790_v53  ;;  %v789_v61 = vmul.f32 %v1305_v54, %v1548_v1  ;;  %1326 = vpow2.f32 %v1138_v43  ;;  %904 = vrot.lane.b32.xlu1 %v788_v30, %s1392_s29  ;;  %v1142_v47 = vmul.f32 -1.442695, %v1707_v31 }
 0x10e   : > { %v1309_v62 = vpop.eup %1308  ;;  %806 = vst.msk [vmem:[%s1590_s28 + $0x20] sm:$0xff] %vm801_vm1, %v773_v56  ;;  %v1681_v63 = vmul.f32 %v1307_v57, %v1555_v8  ;;  %1328 = vpow2.f32 %v1154_v46 }
 0x10f   : > { %v1311_v0 = vpop.eup %1310  ;;  %822 = vst.msk [vmem:[%s1590_s28 + $0xa0] sm:$0xff] %vm801_vm1, %v789_v61  ;;  %v696_v2 = vadd.f32 1.0, %v1309_v62  ;;  %1330 = vpow2.f32 %v1141_v50  ;;  %v1158_v50 = vmul.f32 -1.442695, %v1718_v13 }
 0x110   : > { %v1313_v4 = vpop.eup %1312  ;;  %809 = vst.msk [vmem:[%s1590_s28 + $0x38] sm:$0xff] %vm801_vm1, %v1681_v63  ;;  %v679_v1 = vadd.f32 1.0, %v1311_v0  ;;  %1332 = vpow2.f32 %v1157_v60  ;;  %902 = vrot.lane.b32.xlu0 %v787_v39, %s1392_s29  ;;  %v1156_v39 = vmul.f32 -1.442695, %v1698_v26 }
 0x111   : > { %v1315_v5 = vpop.eup %1314  ;;  %1334 = vrcp.f32 %v696_v2  ;;  %v695_v6 = vadd.f32 1.0, %v1313_v4  ;;  %870 = vrot.lane.b32.xlu1 %v771_v34, %s1392_s29  ;;  %v1140_v34 = vmul.f32 -1.442695, %v1694_v37 }
 0x112   : > { %v1317_v8 = vpop.eup %1316  ;;  %1336 = vrcp.f32 %v679_v1  ;;  %v682_v10 = vadd.f32 1.0, %v1315_v5 }
 0x113   : > { %v1319_v11 = vpop.eup %1318  ;;  %1338 = vrcp.f32 %v695_v6  ;;  %v698_v14 = vadd.f32 1.0, %v1317_v8 }
 0x114   : > { %v1321_v16 = vpop.eup %1320  ;;  %1340 = vrcp.f32 %v682_v10  ;;  %v681_v17 = vadd.f32 1.0, %v1319_v11  ;;  %874 = vrot.lane.b32.xlu0 %v773_v56, %s1392_s29 }
 0x115   : > { %v1323_v19 = vpop.eup %1322  ;;  %1342 = vrcp.f32 %v698_v14  ;;  %v697_v21 = vadd.f32 1.0, %v1321_v16  ;;  %876 = vrot.lane.b32.xlu1 %v774_v44, %s1392_s29  ;;  %v1143_v44 = vmul.f32 -1.442695, %v1702_v29 }
 0x116   : > { %v1325_v22 = vpop.eup %1324  ;;  %1344 = vrcp.f32 %v681_v17  ;;  %v684_v36 = vadd.f32 1.0, %v1323_v19 }
 0x117   : > { %v1327_v24 = vpop.eup %1326  ;;  %1346 = vrcp.f32 %v697_v21  ;;  %v700_v25 = vadd.f32 1.0, %v1325_v22 }
 0x118   : > { %v1329_v27 = vpop.eup %1328  ;;  %1348 = vrcp.f32 %v684_v36  ;;  %v683_v41 = vadd.f32 1.0, %v1327_v24  ;;  %906 = vrot.lane.b32.xlu0 %v789_v61, %s1392_s29 }
 0x119   : > { %v1331_v30 = vpop.eup %1330  ;;  %1350 = vrcp.f32 %v700_v25  ;;  %v699_v55 = vadd.f32 1.0, %v1329_v27  ;;  %908 = vrot.lane.b32.xlu1 %v790_v53, %s1392_s29 }
 0x11a   : > { %v1333_v59 = vpop.eup %1332  ;;  %1352 = vrcp.f32 %v683_v41  ;;  %v686_v32 = vadd.f32 1.0, %v1331_v30 }
 0x11b   : > { %v1335_v35 = vpop.eup %1334  ;;  %1354 = vrcp.f32 %v699_v55  ;;  %v702_v38 = vadd.f32 1.0, %v1333_v59 }
 0x11c   : > { %v1337_v43 = vpop.eup %1336  ;;  %v792_v52 = vmul.f32 %v1335_v35, %v1563_v42  ;;  %1356 = vrcp.f32 %v686_v32  ;;  %v1159_v42 = vmul.f32 -1.442695, %v1713_v9 }
 0x11d   : > { %v1339_v46 = vpop.eup %1338  ;;  %v775_v15 = vmul.f32 %v1337_v43, %v1566_v45  ;;  %1358 = vrcp.f32 %v702_v38  ;;  %880 = vrot.lane.b32.xlu1 %v1681_v63, %s1392_s29 }
 0x11e   : > { %v1341_v53 = vpop.eup %1340  ;;  %825 = vst.msk [vmem:[%s1590_s28 + $0xb8] sm:$0xff] %vm801_vm1, %v792_v52  ;;  %v791_v33 = vmul.f32 %v1339_v46, %v1571_v51  ;;  %1360 = vpow2.f32 %v1140_v34 }
 0x11f   : > { %v1343_v20 = vpop.eup %1342  ;;  %808 = vst.msk [vmem:[%s1590_s28 + $0x30] sm:$0xff] %vm801_vm1, %v775_v15  ;;  %v778_v45 = vmul.f32 %v1341_v53, %v1578_v58  ;;  %1362 = vpow2.f32 %v1156_v39  ;;  %878 = vrot.lane.b32.xlu0 %v775_v15, %s1392_s29 }
 0x120   : > { %v1345_v54 = vpop.eup %1344  ;;  %824 = vst.msk [vmem:[%s1590_s28 + $0xb0] sm:$0xff] %vm801_vm1, %v791_v33  ;;  %v794_v51 = vmul.f32 %v1343_v20, %v1584_v3  ;;  %1364 = vpow2.f32 %v1143_v44 }
 0x121   : > { %v1347_v56 = vpop.eup %1346  ;;  %811 = vst.msk [vmem:[%s1590_s28 + $0x48] sm:$0xff] %vm801_vm1, %v778_v45  ;;  %v777_v60 = vmul.f32 %v1345_v54, %v1594_v7  ;;  %1366 = vpow2.f32 %v1142_v47  ;;  %912 = vrot.lane.b32.xlu1 %v792_v52, %s1392_s29 }
 0x122   : > { %v1349_v58 = vpop.eup %1348  ;;  %827 = vst.msk [vmem:[%s1590_s28 + $0xc8] sm:$0xff] %vm801_vm1, %v794_v51  ;;  %v793_v57 = vmul.f32 %v1347_v56, %v1600_v12  ;;  %1368 = vpow2.f32 %v1159_v42 }
 0x123   : > { %v1351_v61 = vpop.eup %1350  ;;  %810 = vst.msk [vmem:[%s1590_s28 + $0x40] sm:$0xff] %vm801_vm1, %v777_v60  ;;  %v780_v3 = vmul.f32 %v1349_v58, %v1609_v18  ;;  %1370 = vpow2.f32 %v1158_v50  ;;  %910 = vrot.lane.b32.xlu0 %v791_v33, %s1392_s29 }
 0x124   : > { %v1353_v7 = vpop.eup %1352  ;;  %826 = vst.msk [vmem:[%s1590_s28 + $0xc0] sm:$0xff] %vm801_vm1, %v793_v57  ;;  %v796_v62 = vmul.f32 %v1351_v61, %v1617_v23 }
 0x125   : > { %v1355_v63 = vpop.eup %1354  ;;  %813 = vst.msk [vmem:[%s1590_s28 + $0x58] sm:$0xff] %vm801_vm1, %v780_v3  ;;  %v779_v12 = vmul.f32 %v1353_v7, %v1626_v40  ;;  %884 = vrot.lane.b32.xlu1 %v778_v45, %s1392_s29 }
 0x126   : > { %v1357_v0 = vpop.eup %1356  ;;  %829 = vst.msk [vmem:[%s1590_s28 + $0xd8] sm:$0xff] %vm801_vm1, %v796_v62  ;;  %v795_v18 = vmul.f32 %v1355_v63, %v1637_v28 }
 0x127   : > { %v1359_v2 = vpop.eup %1358  ;;  %812 = vst.msk [vmem:[%s1590_s28 + $0x50] sm:$0xff] %vm801_vm1, %v779_v12  ;;  %v782_v4 = vmul.f32 %v1357_v0, %v1645_v48  ;;  %882 = vrot.lane.b32.xlu0 %v777_v60, %s1392_s29 }
 0x128   : > { %v1361_v23 = vpop.eup %1360  ;;  %828 = vst.msk [vmem:[%s1590_s28 + $0xd0] sm:$0xff] %vm801_vm1, %v795_v18  ;;  %v798_v40 = vmul.f32 %v1359_v2, %v1653_v49 }
 0x129   : > { %v1363_v1 = vpop.eup %1362  ;;  %815 = vst.msk [vmem:[%s1590_s28 + $0x68] sm:$0xff] %vm801_vm1, %v782_v4  ;;  %v685_v5 = vadd.f32 1.0, %v1361_v23  ;;  %916 = vrot.lane.b32.xlu1 %v794_v51, %s1392_s29 }
 0x12a   : > { %v1365_v6 = vpop.eup %1364  ;;  %831 = vst.msk [vmem:[%s1590_s28 + $0xe8] sm:$0xff] %vm801_vm1, %v798_v40  ;;  %v701_v28 = vadd.f32 1.0, %v1363_v1 }
 0x12b   : > { %v1367_v8 = vpop.eup %1366  ;;  %1372 = vrcp.f32 %v685_v5  ;;  %v688_v48 = vadd.f32 1.0, %v1365_v6  ;;  %914 = vrot.lane.b32.xlu0 %v793_v57, %s1392_s29 }
 0x12c   : > { %v1369_v10 = vpop.eup %1368  ;;  %1374 = vrcp.f32 %v701_v28  ;;  %v687_v11 = vadd.f32 1.0, %v1367_v8 }
 0x12d   : > { %v1371_v14 = vpop.eup %1370  ;;  %1376 = vrcp.f32 %v688_v48  ;;  %v704_v49 = vadd.f32 1.0, %v1369_v10  ;;  %888 = vrot.lane.b32.xlu1 %v780_v3, %s1392_s29 }
 0x12e   : > { %1378 = vrcp.f32 %v687_v11  ;;  %v703_v16 = vadd.f32 1.0, %v1371_v14 }
 0x12f   : > { %1380 = vrcp.f32 %v704_v49  ;;  %886 = vrot.lane.b32.xlu0 %v779_v12, %s1392_s29 }
 0x130   : > { %1382 = vrcp.f32 %v703_v16 }
 0x131   : > { %920 = vrot.lane.b32.xlu1 %v796_v62, %s1392_s29 }
 0x133   : > { %918 = vrot.lane.b32.xlu0 %v795_v18, %s1392_s29 }
 0x135   : > { %v1373_v17 = vpop.eup %1372  ;;  %892 = vrot.lane.b32.xlu1 %v782_v4, %s1392_s29 }
 0x136   : > { %v1375_v19 = vpop.eup %1374  ;;  %v781_v21 = vmul.f32 %v1373_v17, %v1694_v37 }
 0x137   : > { %v1377_v22 = vpop.eup %1376  ;;  %v797_v36 = vmul.f32 %v1375_v19, %v1698_v26 }
 0x138   : > { %v1379_v24 = vpop.eup %1378  ;;  %814 = vst.msk [vmem:[%s1590_s28 + $0x60] sm:$0xff] %vm801_vm1, %v781_v21  ;;  %v784_v25 = vmul.f32 %v1377_v22, %v1702_v29  ;;  %890 = vrot.lane.b32.xlu0 %v781_v21, %s1392_s29 }
 0x139   : > { %v1381_v27 = vpop.eup %1380  ;;  %830 = vst.msk [vmem:[%s1590_s28 + $0xe0] sm:$0xff] %vm801_vm1, %v797_v36  ;;  %v783_v41 = vmul.f32 %v1379_v24, %v1707_v31  ;;  %924 = vrot.lane.b32.xlu1 %v798_v40, %s1392_s29 }
 0x13a   : > { %v1383_v37 = vpop.eup %1382  ;;  %817 = vst.msk [vmem:[%s1590_s28 + $0x78] sm:$0xff] %vm801_vm1, %v784_v25  ;;  %v800_v26 = vmul.f32 %v1381_v27, %v1713_v9 }
 0x13b   : > { %816 = vst.msk [vmem:[%s1590_s28 + $0x70] sm:$0xff] %vm801_vm1, %v783_v41  ;;  %v799_v30 = vmul.f32 %v1383_v37, %v1718_v13 }
 0x13c   : > { %833 = vst.msk [vmem:[%s1590_s28 + $0xf8] sm:$0xff] %vm801_vm1, %v800_v26  ;;  %922 = vrot.lane.b32.xlu0 %v797_v36, %s1392_s29 }
 0x13d   : > { %832 = vst.msk [vmem:[%s1590_s28 + $0xf0] sm:$0xff] %vm801_vm1, %v799_v30  ;;  %896 = vrot.lane.b32.xlu1 %v784_v25, %s1392_s29 }
 0x140   : > { %894 = vrot.lane.b32.xlu0 %v783_v41, %s1392_s29 }
 0x141   : > { %928 = vrot.lane.b32.xlu1 %v800_v26, %s1392_s29 }
 0x144   : > { %926 = vrot.lane.b32.xlu0 %v799_v30, %s1392_s29 }
 0x176   : > { %v869_v29 = vpop.permute.xlu0 %868 }
 0x177   : > { %v901_v55 = vpop.permute.xlu1 %900  ;;  %963 = vst.msk [vmem:[%s1806_s6 + $0x8] sm:$0xff] %vm801_vm1, %v869_v29 }
 0x178   : > { %979 = vst.msk [vmem:[%s1806_s6 + $0x88] sm:$0xff] %vm801_vm1, %v901_v55 }
 0x17a   : > { %v867_v31 = vpop.permute.xlu0 %866 }
 0x17b   : > { %v873_v59 = vpop.permute.xlu1 %872  ;;  %962 = vst.msk [vmem:[%s1806_s6] sm:$0xff] %vm801_vm1, %v867_v31 }
 0x17c   : > { %965 = vst.msk [vmem:[%s1806_s6 + $0x18] sm:$0xff] %vm801_vm1, %v873_v59 }
 0x17e   : > { %v899_v32 = vpop.permute.xlu0 %898 }
 0x17f   : > { %v905_v34 = vpop.permute.xlu1 %904  ;;  %978 = vst.msk [vmem:[%s1806_s6 + $0x80] sm:$0xff] %vm801_vm1, %v899_v32 }
 0x180   : > { %981 = vst.msk [vmem:[%s1806_s6 + $0x98] sm:$0xff] %vm801_vm1, %v905_v34 }
 0x182   : > { %v903_v9 = vpop.permute.xlu0 %902 }
 0x183   : > { %v871_v35 = vpop.permute.xlu1 %870  ;;  %980 = vst.msk [vmem:[%s1806_s6 + $0x90] sm:$0xff] %vm801_vm1, %v903_v9 }
 0x184   : > { %964 = vst.msk [vmem:[%s1806_s6 + $0x10] sm:$0xff] %vm801_vm1, %v871_v35 }
 0x186   : > { %v875_v38 = vpop.permute.xlu0 %874 }
 0x187   : > { %v877_v39 = vpop.permute.xlu1 %876  ;;  %966 = vst.msk [vmem:[%s1806_s6 + $0x20] sm:$0xff] %vm801_vm1, %v875_v38 }
 0x188   : > { %967 = vst.msk [vmem:[%s1806_s6 + $0x28] sm:$0xff] %vm801_vm1, %v877_v39 }
 0x18a   : > { %v907_v13 = vpop.permute.xlu0 %906 }
 0x18b   : > { %v909_v43 = vpop.permute.xlu1 %908  ;;  %982 = vst.msk [vmem:[%s1806_s6 + $0xa0] sm:$0xff] %vm801_vm1, %v907_v13 }
 0x18c   : > { %983 = vst.msk [vmem:[%s1806_s6 + $0xa8] sm:$0xff] %vm801_vm1, %v909_v43 }
 0x18f   : > { %v881_v52 = vpop.permute.xlu1 %880 }
 0x190   : > { %969 = vst.msk [vmem:[%s1806_s6 + $0x38] sm:$0xff] %vm801_vm1, %v881_v52 }
 0x191   : > { %v879_v44 = vpop.permute.xlu0 %878 }
 0x192   : > { %968 = vst.msk [vmem:[%s1806_s6 + $0x30] sm:$0xff] %vm801_vm1, %v879_v44 }
 0x193   : > { %v913_v46 = vpop.permute.xlu1 %912 }
 0x194   : > { %985 = vst.msk [vmem:[%s1806_s6 + $0xb8] sm:$0xff] %vm801_vm1, %v913_v46 }
 0x195   : > { %v911_v15 = vpop.permute.xlu0 %910 }
 0x196   : > { %984 = vst.msk [vmem:[%s1806_s6 + $0xb0] sm:$0xff] %vm801_vm1, %v911_v15 }
 0x197   : > { %v885_v47 = vpop.permute.xlu1 %884 }
 0x198   : > { %971 = vst.msk [vmem:[%s1806_s6 + $0x48] sm:$0xff] %vm801_vm1, %v885_v47 }
 0x199   : > { %v883_v53 = vpop.permute.xlu0 %882 }
 0x19a   : > { %970 = vst.msk [vmem:[%s1806_s6 + $0x40] sm:$0xff] %vm801_vm1, %v883_v53 }
 0x19b   : > { %v917_v33 = vpop.permute.xlu1 %916 }
 0x19c   : > { %987 = vst.msk [vmem:[%s1806_s6 + $0xc8] sm:$0xff] %vm801_vm1, %v917_v33 }
 0x19d   : > { %v915_v42 = vpop.permute.xlu0 %914 }
 0x19e   : > { %986 = vst.msk [vmem:[%s1806_s6 + $0xc0] sm:$0xff] %vm801_vm1, %v915_v42 }
 0x19f   : > { %v889_v20 = vpop.permute.xlu1 %888 }
 0x1a0   : > { %973 = vst.msk [vmem:[%s1806_s6 + $0x58] sm:$0xff] %vm801_vm1, %v889_v20 }
 0x1a1   : > { %v887_v45 = vpop.permute.xlu0 %886 }
 0x1a2   : > { %972 = vst.msk [vmem:[%s1806_s6 + $0x50] sm:$0xff] %vm801_vm1, %v887_v45 }
 0x1a3   : > { %v921_v50 = vpop.permute.xlu1 %920 }
 0x1a4   : > { %989 = vst.msk [vmem:[%s1806_s6 + $0xd8] sm:$0xff] %vm801_vm1, %v921_v50 }
 0x1a5   : > { %v919_v54 = vpop.permute.xlu0 %918 }
 0x1a6   : > { %988 = vst.msk [vmem:[%s1806_s6 + $0xd0] sm:$0xff] %vm801_vm1, %v919_v54 }
 0x1a7   : > { %v893_v51 = vpop.permute.xlu1 %892 }
 0x1a8   : > { %975 = vst.msk [vmem:[%s1806_s6 + $0x68] sm:$0xff] %vm801_vm1, %v893_v51 }
 0x1aa   : > { %v891_v56 = vpop.permute.xlu0 %890 }
 0x1ab   : > { %974 = vst.msk [vmem:[%s1806_s6 + $0x60] sm:$0xff] %vm801_vm1, %v891_v56  ;;  %v925_v60 = vpop.permute.xlu1 %924 }
 0x1ac   : > { %991 = vst.msk [vmem:[%s1806_s6 + $0xe8] sm:$0xff] %vm801_vm1, %v925_v60 }
 0x1ae   : > { %v923_v58 = vpop.permute.xlu0 %922 }
 0x1af   : > { %990 = vst.msk [vmem:[%s1806_s6 + $0xe0] sm:$0xff] %vm801_vm1, %v923_v58  ;;  %v897_v57 = vpop.permute.xlu1 %896 }
 0x1b0   : > { %977 = vst.msk [vmem:[%s1806_s6 + $0x78] sm:$0xff] %vm801_vm1, %v897_v57 }
 0x1b2   : > { %v895_v61 = vpop.permute.xlu0 %894 }
 0x1b3   : > { %976 = vst.msk [vmem:[%s1806_s6 + $0x70] sm:$0xff] %vm801_vm1, %v895_v61  ;;  %v929_v3 = vpop.permute.xlu1 %928 }
 0x1b4   : > { %993 = vst.msk [vmem:[%s1806_s6 + $0xf8] sm:$0xff] %vm801_vm1, %v929_v3 }
 0x1b6   : > { %v927_v7 = vpop.permute.xlu0 %926 }
 0x1b7   : > { %992 = vst.msk [vmem:[%s1806_s6 + $0xf0] sm:$0xff] %vm801_vm1, %v927_v7 }
 0x1b8 PF: > { %s15_s15 = sadd.s32 1, %s1390_s15  }
 0x1b9   : > { %p12_p4 = scmp.ge.s32.totalorder %s15_s15, 4  }
 0x1bb   :  { %14 = sbr.rel (!%p12_p4) target bundleno = 1 (0x1), region = 74 }

</bundles_post_ra>
